<compile_context>
chip_gen: v7x
topology: tpu7x:2x2x1
jax: 0.10.0
libtpu: 0.0.40
codegen_flags: <defaults>
</compile_context>

<pallas_src>
import math

import jax
import jax.numpy as jnp
from jax.experimental import pallas as pl
from jax.experimental.pallas import tpu as pltpu

EPS = 1e-5


def _ada_ins_norm_kernel(x_ref, scale_ref, shift_ref, o_ref):
    # x_ref:     (Bt, T, ct)  current (batch-group, channel-tile) slab
    # scale_ref: (Bt, 1, ct)
    # shift_ref: (Bt, 1, ct)
    # o_ref:     (Bt, T, ct)
    x = x_ref[...].astype(jnp.float32)                         # (Bt, T, ct)

    # --- instance-norm statistics over the sequence axis (per batch, per channel) ---
    mean = jnp.mean(x, axis=1, keepdims=True)                  # (Bt, 1, ct)
    var = jnp.mean((x - mean) ** 2, axis=1, keepdims=True)     # biased variance
    inv = jax.lax.rsqrt(var + EPS)                             # (Bt, 1, ct)

    # --- fused normalize + modulate:  out = x * a + c ---
    a = inv * (1.0 + scale_ref[...])                           # (Bt, 1, ct)
    c = shift_ref[...] - mean * a                              # (Bt, 1, ct)
    o_ref[...] = (x * a + c).astype(o_ref.dtype)


def sinusoidal_pos_emb(timestep, dim):
    # Plain-JAX glue (tiny elementwise op), matching SinusoidalPosEmb.
    assert dim > 2 and dim % 2 == 0, "sinusoidal embedding requires even dim > 2"
    half = dim // 2
    freq = jnp.exp(jnp.arange(half, dtype=jnp.float32) * -(math.log(10000.0) / (half - 1)))
    emb = timestep.astype(jnp.float32)[:, None] * freq[None, :]
    return jnp.concatenate([jnp.sin(emb), jnp.cos(emb)], axis=-1)   # (B, dim)


def _vmem_capacity_bytes():
    """Per-core VMEM capacity; falls back to the smallest current chip (v7x, 64 MiB)."""
    try:
        info = pltpu.get_tpu_info()
        cap = getattr(info, "vmem_capacity_bytes", None)
        if cap:
            return int(cap)
    except Exception:
        pass
    return 64 << 20


def _choose_tiling(B, T, C, itemsize):
    """Pick (Bt, ct, vmem_limit_bytes) by VMEM/byte budget.

    Preference order:
      1. ct == C (contiguous blocks) whenever a (1, T, C) block fits the budget,
         or when C is not a multiple of 128 (full extent is the only legal choice).
      2. Otherwise the largest multiple-of-128 divisor of C that fits.
      3. Bt = largest divisor of B such that the block fits AND enough grid steps
         remain to keep both v7x TensorCores fed (when there is enough data).
    """
    cap = _vmem_capacity_bytes()
    # Budget for the streaming x/out blocks; leaves room for scale/shift buffers
    # and compiler scratch, and stays well inside physical VMEM on every chip.
    budget = min(int(cap * 0.60), 96 << 20)
    per_block_cap = budget // 4            # in + out, each double-buffered

    # --- channel tile ---
    if C <= 128 or C % 128 != 0 or T * C * itemsize <= per_block_cap:
        ct = C
    else:
        ct = None
        for k in range(C // 128, 0, -1):
            cand = k * 128
            if C % cand == 0 and T * cand * itemsize <= per_block_cap:
                ct = cand
                break
        if ct is None:
            # TODO(synk): needs the T-tiled two-sweep fallback; keep smallest lane-dense tile.
            ct = 128
    n_ct = C // ct

    # --- batch grouping ---
    total_bytes = B * T * C * itemsize
    # Only insist on several grid steps when there is enough data for pipelining /
    # dual-TensorCore balance to matter.
    min_steps = 8 if total_bytes >= (16 << 20) else 1
    Bt = 1
    for cand in range(B, 0, -1):
        if B % cand:
            continue
        if cand * T * ct * itemsize > per_block_cap:
            continue
        if (B // cand) * n_ct < min_steps and cand > 1:
            continue
        Bt = cand
        break

    # --- VMEM limit derived from the actual block footprint (never below it) ---
    blk = Bt * T * ct * itemsize           # one x (or out) block
    ss_blk = 2 * Bt * ct * 4               # scale + shift blocks (f32)
    needed = 4 * blk + 2 * ss_blk + (2 << 20)   # double-buffered in+out + params + headroom
    vmem_limit = int(min(max(needed, 16 << 20), cap))
    return Bt, ct, vmem_limit


def ada_ins_norm(x, timestep, w, b, label_emb=None):
    """x: (B, T, C); timestep: (B,); w: (C, 2C) [in, out]; b: (2C,)."""
    B, T, C = x.shape
    itemsize = x.dtype.itemsize

    # --- adaptive parameters computed once in XLA (hoisted out of the kernel) ---
    emb = sinusoidal_pos_emb(timestep, C)                     # (B, C)
    if label_emb is not None:
        emb = emb + label_emb
    e = emb * jax.nn.sigmoid(emb)                             # SiLU
    h = (e @ w + b).astype(jnp.float32)                       # (B, 2C)
    scale = h[:, :C].reshape(B, 1, C)
    shift = h[:, C:].reshape(B, 1, C)

    Bt, ct, vmem_limit = _choose_tiling(B, T, C, itemsize)
    n_b, n_ct = B // Bt, C // ct

    cost = pl.CostEstimate(
        flops=6 * B * T * C,
        transcendentals=0,
        bytes_accessed=2 * B * T * C * itemsize + 4 * B * C * 4,
    )

    return pl.pallas_call(
        _ada_ins_norm_kernel,
        out_shape=jax.ShapeDtypeStruct((B, T, C), x.dtype),
        grid_spec=pltpu.PrefetchScalarGridSpec(
            num_scalar_prefetch=0,
            grid=(n_b, n_ct),
            in_specs=[
                pl.BlockSpec((Bt, T, ct), lambda i, j: (i, 0, j)),   # x
                pl.BlockSpec((Bt, 1, ct), lambda i, j: (i, 0, j)),   # scale
                pl.BlockSpec((Bt, 1, ct), lambda i, j: (i, 0, j)),   # shift
            ],
            out_specs=pl.BlockSpec((Bt, T, ct), lambda i, j: (i, 0, j)),
        ),
        compiler_params=pltpu.CompilerParams(
            dimension_semantics=("parallel", "parallel"),
            vmem_limit_bytes=vmem_limit,
        ),
        cost_estimate=cost,
    )(x, scale, shift)


def ada_ins_norm_ref(x, timestep, w, b, label_emb=None):
    """Pure-JAX reference mirroring the PyTorch forward."""
    B, T, C = x.shape
    emb = sinusoidal_pos_emb(timestep, C)                     # (B, C)
    if label_emb is not None:
        emb = emb + label_emb
    e = emb * jax.nn.sigmoid(emb)                             # SiLU
    h = e @ w + b                                             # (B, 2C)
    scale, shift = h[:, None, :C], h[:, None, C:]             # (B, 1, C)
    mean = jnp.mean(x, axis=1, keepdims=True)
    var = jnp.mean((x - mean) ** 2, axis=1, keepdims=True)
    normed = (x - mean) / jnp.sqrt(var + EPS)
    return normed * (1.0 + scale) + shift


if __name__ == "__main__":
    B, T, C = 2, 8, 32     # batch, seq, n_embd (toy shapes consistent with the module)

    key = jax.random.PRNGKey(0)
    kx, kt, kw, kb = jax.random.split(key, 4)

    x = jax.random.normal(kx, (B, T, C), dtype=jnp.float32)
    timestep = jax.random.uniform(kt, (B,), minval=0.0, maxval=100.0, dtype=jnp.float32)
    # "Linear(n_embd, 2*n_embd)" params; PyTorch stores W as [out, in] — kept
    # pre-transposed here as [in, out].
    bound = 1.0 / math.sqrt(C)
    w = jax.random.uniform(kw, (C, 2 * C), minval=-bound, maxval=bound, dtype=jnp.float32)
    b = jax.random.uniform(kb, (2 * C,), minval=-bound, maxval=bound, dtype=jnp.float32)

    out = ada_ins_norm(x, timestep, w, b)
    out = jax.block_until_ready(out)

    ref = ada_ins_norm_ref(x, timestep, w, b)
    assert out.shape == (B, T, C)
    assert jnp.allclose(out, ref, atol=1e-4, rtol=1e-4), "mismatch vs reference"

    print("KERNEL_OK")
</pallas_src>

<mosaic_0001>
module attributes {stable_mosaic.version = 11 : i64} {
  func.func @_ada_ins_norm_kernel(%arg0: i32, %arg1: i32, %arg2: memref<2x8x32xf32, #tpu.memory_space<vmem>>, %arg3: memref<2x1x32xf32, #tpu.memory_space<vmem>>, %arg4: memref<2x1x32xf32, #tpu.memory_space<vmem>>, %arg5: memref<2x8x32xf32, #tpu.memory_space<vmem>>) attributes {dimension_semantics = [#tpu.dimension_semantics<parallel>, #tpu.dimension_semantics<parallel>], iteration_bounds = array<i64: 1, 1>, scalar_prefetch = 0 : i64, scratch_operands = 0 : i64, tpu.core_type = #tpu.core_type<tc>, window_params = [{transform_indices = @transform_0, window_bounds = array<i64: 2, 8, 32>}, {transform_indices = @transform_1, window_bounds = array<i64: 2, 1, 32>}, {transform_indices = @transform_2, window_bounds = array<i64: 2, 1, 32>}, {transform_indices = @transform_3, window_bounds = array<i64: 2, 8, 32>}]} {
    %c0 = arith.constant 0 : index
    %c0_0 = arith.constant 0 : index
    %c0_1 = arith.constant 0 : index
    %0 = vector.load %arg2[%c0, %c0_0, %c0_1] : memref<2x8x32xf32, #tpu.memory_space<vmem>>, vector<2x8x32xf32>
    %cst = arith.constant dense<0.000000e+00> : vector<2x32xf32>
    %1 = vector.multi_reduction <add>, %0, %cst [1] : vector<2x8x32xf32> to vector<2x32xf32>
    %2 = vector.shape_cast %1 : vector<2x32xf32> to vector<2x1x32xf32>
    %cst_2 = arith.constant 8.000000e+00 : f32
    %3 = vector.broadcast %cst_2 : f32 to vector<2x1x32xf32>
    %4 = arith.divf %2, %3 : vector<2x1x32xf32>
    %5 = vector.broadcast %4 : vector<2x1x32xf32> to vector<2x8x32xf32>
    %6 = arith.subf %0, %5 : vector<2x8x32xf32>
    %7 = arith.mulf %6, %6 : vector<2x8x32xf32>
    %cst_3 = arith.constant dense<0.000000e+00> : vector<2x32xf32>
    %8 = vector.multi_reduction <add>, %7, %cst_3 [1] : vector<2x8x32xf32> to vector<2x32xf32>
    %9 = vector.shape_cast %8 : vector<2x32xf32> to vector<2x1x32xf32>
    %cst_4 = arith.constant 8.000000e+00 : f32
    %10 = vector.broadcast %cst_4 : f32 to vector<2x1x32xf32>
    %11 = arith.divf %9, %10 : vector<2x1x32xf32>
    %cst_5 = arith.constant 9.99999974E-6 : f32
    %12 = vector.broadcast %cst_5 : f32 to vector<2x1x32xf32>
    %13 = arith.addf %11, %12 : vector<2x1x32xf32>
    %14 = math.rsqrt %13 : vector<2x1x32xf32>
    %c0_6 = arith.constant 0 : index
    %c0_7 = arith.constant 0 : index
    %c0_8 = arith.constant 0 : index
    %15 = vector.load %arg3[%c0_6, %c0_7, %c0_8] : memref<2x1x32xf32, #tpu.memory_space<vmem>>, vector<2x1x32xf32>
    %cst_9 = arith.constant 1.000000e+00 : f32
    %16 = vector.broadcast %cst_9 : f32 to vector<2x1x32xf32>
    %17 = arith.addf %16, %15 : vector<2x1x32xf32>
    %18 = arith.mulf %14, %17 : vector<2x1x32xf32>
    %c0_10 = arith.constant 0 : index
    %c0_11 = arith.constant 0 : index
    %c0_12 = arith.constant 0 : index
    %19 = vector.load %arg4[%c0_10, %c0_11, %c0_12] : memref<2x1x32xf32, #tpu.memory_space<vmem>>, vector<2x1x32xf32>
    %20 = arith.mulf %4, %18 : vector<2x1x32xf32>
    %21 = arith.subf %19, %20 : vector<2x1x32xf32>
    %22 = vector.broadcast %18 : vector<2x1x32xf32> to vector<2x8x32xf32>
    %23 = arith.mulf %0, %22 : vector<2x8x32xf32>
    %24 = vector.broadcast %21 : vector<2x1x32xf32> to vector<2x8x32xf32>
    %25 = arith.addf %23, %24 : vector<2x8x32xf32>
    %c0_13 = arith.constant 0 : index
    %c0_14 = arith.constant 0 : index
    %c0_15 = arith.constant 0 : index
    %26 = vector.load %arg5[%c0_13, %c0_14, %c0_15] : memref<2x8x32xf32, #tpu.memory_space<vmem>>, vector<2x8x32xf32>
    tpu.vector_store %arg5[%c0_13, %c0_14, %c0_15], %25 {strides = array<i32>} : memref<2x8x32xf32, #tpu.memory_space<vmem>>, vector<2x8x32xf32>,
    return
  }
  func.func @transform_0(%arg0: i32, %arg1: i32) -> (i32, i32, i32) {
    %c0_i32 = arith.constant 0 : i32
    %c0_i32_0 = arith.constant 0 : i32
    return %arg0, %c0_i32, %arg1 : i32, i32, i32
  }
  func.func @transform_1(%arg0: i32, %arg1: i32) -> (i32, i32, i32) {
    %c0_i32 = arith.constant 0 : i32
    %c0_i32_0 = arith.constant 0 : i32
    return %arg0, %c0_i32, %arg1 : i32, i32, i32
  }
  func.func @transform_2(%arg0: i32, %arg1: i32) -> (i32, i32, i32) {
    %c0_i32 = arith.constant 0 : i32
    %c0_i32_0 = arith.constant 0 : i32
    return %arg0, %c0_i32, %arg1 : i32, i32, i32
  }
  func.func @transform_3(%arg0: i32, %arg1: i32) -> (i32, i32, i32) {
    %c0_i32 = arith.constant 0 : i32
    %c0_i32_0 = arith.constant 0 : i32
    return %arg0, %c0_i32, %arg1 : i32, i32, i32
  }
}

</mosaic_0001>

<bundles_post_ra>
// kernel: tpu_custom_call.1
= control target key start
LH: loop header
LB: loop body
LE: loop exit
PB: predicated region body
PF: predicated region fallthrough
CT: control target
= control target key end

     0   :  { %8 = vsyncpa [#allocation3], 0  ;;  %s256_s0 = inlined_call_operand.hbm [shape: f32[2,8,32], index: 0, kind: input, shape index: {}]   ;;  %s257_s1 = inlined_call_operand.vmem [shape: f32[2,1,32], index: 1, kind: input, shape index: {}]   ;;  %s258_s2 = inlined_call_operand.vmem [shape: f32[2,1,32], index: 2, kind: input, shape index: {}]   ;;  %s259_s3 = inlined_call_operand.hbm [shape: f32[2,8,32], index: 3, kind: output, shape index: {}]  }
   0x1   :  { %9 = vsyncpa [#allocation4], 0  ;;  %s184_s12 = smov [#allocation2]   ;;  %s136_s16 = scalar_lea.hbm %s256_s0, 256 }
   0x2   :  { %s15_s13 = sshll.u32 %s184_s12, 4  ;;  %p137_p0 = scmp.ne.s32.totalorder %s256_s0, %s136_s16  ;;  %s16_s13 = int_to_ptr.vmem [resolvable:$true] %s15_s13 }
   0x3   :  { %p140_p1 = scmp.lt.u32.totalorder %s136_s16, %s256_s0 }
   0x5   :  { %p142_p2 = pnand %p140_p1, %p137_p0 }
   0x7   :  { %145 = shalt.err (!%p142_p2)
}
   0x8   :  { %s146_s21 = scalar_lea.vmem %s16_s13, 256  ;;  %p151_p4 = scmp.lt.s32.totalorder %s16_s13, %s16_s13 }
   0x9   :  { %p147_p3 = scmp.ne.s32.totalorder %s16_s13, %s146_s21  ;;  %p152_p5 = scmp.lt.s32.totalorder %s146_s21, %s146_s21 }
   0xb   :  { %p153_p6 = por %p152_p5, %p151_p4 }
   0xd   :  { %p154_p7 = pnand %p153_p6, %p147_p3 }
   0xf   :  { %157 = shalt.err (!%p154_p7)
}
  0x10   :  { %s185_s22 = smov 128   ;;  %s186_s23 = smov 8  }
  0x11   :  { %21 = dma.hbm_to_vmem [thread:$0]  %s256_s0, 256, %s16_s13, [#allocation3], %s185_s22, %s185_s22, %s186_s23  }
  0x12   :  { %180 = dma.done.wait [#allocation3], 256  }
  0x13   :  { %181 = vsyncadd [#allocation3], 4294967040  ;;  %vm31_vm0 = vcmask 261120   ;;  %v29_v0 = vld [vmem:[#allocation2] sm:$0xff]  ;;  %v30_v2 = vld [vmem:[#allocation2 + $0x8] sm:$0xff]  ;;  %v85_v40 = vlaneseq }
  0x14   :  { %v32_v1 = vsel %vm31_vm0, %v29_v0, 0.0  ;;  %v39_v4 = vsel %vm31_vm0, %v30_v2, 0.0  ;;  %v73_v41 = vld [vmem:[%s257_s1] sm:$0x1]  ;;  %v74_v43 = vld [vmem:[%s257_s1 + $0x1] sm:$0x1] }
  0x15   :  { %v33_v3 = vrot.slane %v32_v1, 4  ;;  %v40_v5 = vrot.slane %v39_v4, 4  ;;  %v86_v42 = vshrl.u32 %v85_v40, 7  ;;  %v75_v44 = vadd.f32 1.0, %v73_v41  ;;  %v79_v50 = vld [vmem:[%s258_s2] sm:$0x1] }
  0x16   :  { %v76_v45 = vadd.f32 1.0, %v74_v43  ;;  %v80_v54 = vld [vmem:[%s258_s2 + $0x1] sm:$0x1]  ;;  %s187_s1 = smov [#allocation5]  }
  0x17   :  { %v34_v6 = vadd.f32 %v33_v3, %v32_v1  ;;  %v41_v7 = vadd.f32 %v40_v5, %v39_v4  ;;  %v87_v46 = vsub.s32 0, %v86_v42  ;;  %s116_s6 = sshll.u32 %s187_s1, 4  ;;  %s117_s6 = int_to_ptr.vmem [resolvable:$true] %s116_s6 }
  0x18   :  { %s158_s7 = scalar_lea.vmem %s117_s6, 256  ;;  %p163_p9 = scmp.lt.s32.totalorder %s117_s6, %s117_s6 }
  0x19   :  { %v35_v8 = vrot.slane %v34_v6, 2  ;;  %v42_v9 = vrot.slane %v41_v7, 2  ;;  %p159_p8 = scmp.ne.s32.totalorder %s117_s6, %s158_s7  ;;  %p164_p10 = scmp.lt.s32.totalorder %s158_s7, %s158_s7 }
  0x1b   :  { %v36_v10 = vadd.f32 %v35_v8, %v34_v6  ;;  %v43_v11 = vadd.f32 %v42_v9, %v41_v7  ;;  %p165_p11 = por %p164_p10, %p163_p9 }
  0x1d   :  { %v37_v12 = vrot.slane %v36_v10, 1  ;;  %v44_v13 = vrot.slane %v43_v11, 1  ;;  %p166_p12 = pnand %p165_p11, %p159_p8 }
  0x1f   :  { %v38_v14 = vadd.f32 %v37_v12, %v36_v10  ;;  %v45_v15 = vadd.f32 %v44_v13, %v43_v11 }
  0x21   :  { %v47_v16 = vmul.f32 0.125, %v38_v14  ;;  %v48_v17 = vmul.f32 0.125, %v45_v15 }
  0x23   :  { %v49_v18 = vsub.f32 %v29_v0, %v47_v16  ;;  %v50_v19 = vsub.f32 %v30_v2, %v48_v17 }
  0x25   :  { %v51_v20 = vmul.f32 %v49_v18, %v49_v18  ;;  %v52_v21 = vmul.f32 %v50_v19, %v50_v19 }
  0x27   :  { %v53_v22 = vsel %vm31_vm0, %v51_v20, 0.0  ;;  %v60_v24 = vsel %vm31_vm0, %v52_v21, 0.0 }
  0x28   :  { %v54_v23 = vrot.slane %v53_v22, 4  ;;  %v61_v25 = vrot.slane %v60_v24, 4 }
  0x2a   :  { %v55_v26 = vadd.f32 %v54_v23, %v53_v22  ;;  %v62_v27 = vadd.f32 %v61_v25, %v60_v24 }
  0x2c   :  { %v56_v28 = vrot.slane %v55_v26, 2  ;;  %v63_v29 = vrot.slane %v62_v27, 2 }
  0x2e   :  { %v57_v30 = vadd.f32 %v56_v28, %v55_v26  ;;  %v64_v31 = vadd.f32 %v63_v29, %v62_v27 }
  0x30   :  { %v58_v32 = vrot.slane %v57_v30, 1  ;;  %v65_v33 = vrot.slane %v64_v31, 1 }
  0x32   :  { %v59_v34 = vadd.f32 %v58_v32, %v57_v30  ;;  %v66_v35 = vadd.f32 %v65_v33, %v64_v31 }
  0x34   :  { %v67_v36 = vmul.f32 0.125, %v59_v34  ;;  %v68_v37 = vmul.f32 0.125, %v66_v35 }
  0x36   :  { %v69_v38 = vadd.f32 1e-05, %v67_v36  ;;  %v70_v39 = vadd.f32 1e-05, %v68_v37 }
  0x38   :  { %132 = vrsqrt.f32 %v69_v38 }
  0x39   :  { %134 = vrsqrt.f32 %v70_v39 }
  0x42   :  { %v133_v47 = vpop.eup %132 }
  0x43   :  { %v135_v48 = vpop.eup %134  ;;  %v77_v49 = vmul.f32 %v133_v47, %v75_v44 }
  0x44   :  { %v78_v51 = vmul.f32 %v135_v48, %v76_v45 }
  0x45   :  { %v81_v52 = vmul.f32 %v77_v49, %v47_v16  ;;  %v88_v53 = vrot.slane %v77_v49, %v87_v46 }
  0x46   :  { %v82_v55 = vmul.f32 %v78_v51, %v48_v17  ;;  %v92_v56 = vrot.slane %v78_v51, %v87_v46 }
  0x47   :  { %v83_v57 = vsub.f32 %v79_v50, %v81_v52  ;;  %v93_v58 = vmul.f32 %v88_v53, %v29_v0 }
  0x48   :  { %v84_v59 = vsub.f32 %v80_v54, %v82_v55  ;;  %v94_v60 = vmul.f32 %v92_v56, %v30_v2 }
  0x49   :  { %v100_v61 = vrot.slane %v83_v57, %v87_v46 }
  0x4a   :  { %v104_v62 = vrot.slane %v84_v59, %v87_v46 }
  0x4b   :  { %v107_v63 = vadd.f32 %v100_v61, %v93_v58 }
  0x4c   :  { %v108_v1 = vadd.f32 %v104_v62, %v94_v60 }
  0x4d   :  { %109 = vst.msk [vmem:[#allocation5] sm:$0xff] %vm31_vm0, %v107_v63 }
  0x4e   :  { %110 = vst.msk [vmem:[#allocation5 + $0x8] sm:$0xff] %vm31_vm0, %v108_v1 }
  0x4f   :  { %169 = shalt.err (!%p166_p12)
}
  0x50   :  { %s170_s9 = scalar_lea.hbm %s259_s3, 256 }
  0x51   :  { %p171_p13 = scmp.ne.s32.totalorder %s259_s3, %s170_s9  ;;  %p174_p0 = scmp.lt.u32.totalorder %s170_s9, %s259_s3 }
  0x53   :  { %p176_p1 = pnand %p174_p0, %p171_p13 }
  0x55   :  { %179 = shalt.err (!%p176_p1)
}
  0x56   :  { %122 = dma.vmem_to_hbm [thread:$0]  %s117_s6, 256, %s259_s3, [#allocation4], %s185_s22, %s185_s22, %s186_s23  }
  0x57   :  { %182 = dma.done.wait [#allocation4], 256  }
  0x58   :  { %183 = vsyncadd [#allocation4], 4294967040 }
  0x59   :  { %126 = vsyncpa [#allocation3], 1 }
  0x5a   :  { %127 = vsyncpa [#allocation4], 1 }

</bundles_post_ra>
